<compile_context>
chip_gen: v6e
topology: v6e:2x2x1
jax: 0.10.0
libtpu: 0.0.40
codegen_flags: <defaults>
</compile_context>

<pallas_src>
import functools

import jax
import jax.numpy as jnp
from jax.experimental import pallas as pl
from jax.experimental.pallas import tpu as pltpu


_DEFAULT_TM = 256               # batch-row tile (multiple of 8)
_DEFAULT_TK = 2048              # reduction tile over flattened features (mult. of 128)
_LANE = 128
_NEG_BIG = -1e30                # bias pad for fake classes -> exp underflows to 0
_WEIGHT_RESIDENT_MAX_BYTES = 16 * 1024 * 1024   # keep W fully VMEM-resident if <= this


def _round_up(a, b):
    return (a + b - 1) // b * b


def _cdiv(a, b):
    return (a + b - 1) // b


def _head_kernel(x_ref, w_ref, b_ref, o_ref, *, tk, in_features, needs_mask,
                 weight_resident):
    """One (row-tile, k-tile) grid step.

    x_ref : [TM, TK]          input tile, native dtype (cast in-kernel)
    w_ref : [IN_pad, OUT_pad] (resident) or [TK, OUT_pad] (streamed), compute dtype
    b_ref : [1, OUT_pad]      f32 bias row (padded classes carry -1e30)
    o_ref : [TM, OUT_pad]     f32 output block, resident across k -> accumulator
    """
    k = pl.program_id(1)

    @pl.when(k == 0)
    def _init():
        o_ref[...] = jnp.zeros_like(o_ref)

    x_tile = x_ref[...]
    if needs_mask:
        # Last K tile reads past the real feature count (x is NOT padded in HBM);
        # zero those columns so OOB garbage (possibly NaN/Inf) never reaches the MXU.
        col = jax.lax.broadcasted_iota(jnp.int32, x_tile.shape, 1) + k * tk
        x_tile = jnp.where(col < in_features, x_tile, jnp.zeros_like(x_tile))
    x_tile = x_tile.astype(w_ref.dtype)        # in-kernel cast (bf16 MXU path for free)

    if weight_resident:
        off = pl.multiple_of(k * tk, tk)
        w_tile = w_ref[pl.ds(off, tk), :]      # slice the VMEM-resident weight
    else:
        w_tile = w_ref[...]                    # streamed [TK, OUT_pad] tile

    o_ref[...] += jnp.dot(x_tile, w_tile, preferred_element_type=jnp.float32)

    @pl.when(k == pl.num_programs(1) - 1)
    def _finalize():
        logits = o_ref[...] + b_ref[...]       # padded classes carry -1e30
        m = jnp.max(logits, axis=-1, keepdims=True)
        e = jnp.exp(logits - m)                # padded lanes -> exactly 0
        denom = jnp.sum(e, axis=-1, keepdims=True)
        # EUP approximate reciprocal + VPU multiply instead of a VALU divide.
        o_ref[...] = (e * pl.reciprocal(denom, approx=True)).astype(o_ref.dtype)


def prepare_head_params(weight, bias, *, tk=_DEFAULT_TK, compute_dtype=jnp.float32):
    """One-time parameter prep (call once at init, NOT per forward).

    weight : [OUT, IN] (PyTorch nn.Linear convention)
    bias   : [OUT]
    Returns (w_prepped [IN_pad, OUT_pad], bias_prepped [1, OUT_pad] f32, meta).
    """
    out_features, in_features = weight.shape
    tk = max(_LANE, (int(tk) // _LANE) * _LANE)

    in_min = _round_up(in_features, _LANE)
    if in_min <= tk:
        tk = in_min                        # single full-extent reduction tile
        in_pad = in_min
    else:
        in_pad = _round_up(in_features, tk)
    out_pad = _round_up(out_features, _LANE)   # minimal lane-dense class dim (=128)

    w_t = jnp.zeros((in_pad, out_pad), dtype=compute_dtype)
    w_t = w_t.at[:in_features, :out_features].set(weight.T.astype(compute_dtype))

    b_p = jnp.full((1, out_pad), _NEG_BIG, dtype=jnp.float32)
    b_p = b_p.at[0, :out_features].set(bias.astype(jnp.float32))

    meta = dict(in_features=in_features, out_features=out_features,
                in_pad=in_pad, out_pad=out_pad, tk=tk)
    return w_t, b_p, meta


def classification_head(x_nchw, w_prep, b_prep, meta, *, tm=_DEFAULT_TM,
                        weight_resident_max_bytes=_WEIGHT_RESIDENT_MAX_BYTES):
    """Forward: softmax(flatten(x) @ W^T + b), probabilities in f32."""
    in_features = meta["in_features"]
    out_features = meta["out_features"]
    in_pad = meta["in_pad"]
    out_pad = meta["out_pad"]
    tk = meta["tk"]
    compute_dtype = w_prep.dtype

    batch = x_nchw.shape[0]
    # nn.Flatten on NCHW: free row-major reshape; NO astype / pad HBM copies of x.
    x_flat = x_nchw.reshape(batch, -1)
    assert x_flat.shape[1] == in_features

    # Row tile: multiple of 8 (or the full batch if tiny); guarantee >= 2 row
    # tiles when batch >= 16 so both v7x TensorCores get work on the "parallel" axis.
    if batch < 8:
        tm_eff = batch
    elif batch < 16:
        tm_eff = 8
    else:
        tm_eff = min(max(8, (int(tm) // 8) * 8), _round_up(_cdiv(batch, 2), 8))

    num_rows = _cdiv(batch, tm_eff)
    num_k = in_pad // tk
    needs_mask = in_pad != in_features          # K tail of x would be out of bounds

    itemsize_w = jnp.dtype(compute_dtype).itemsize
    itemsize_x = jnp.dtype(x_flat.dtype).itemsize
    w_bytes = in_pad * out_pad * itemsize_w
    weight_resident = w_bytes <= weight_resident_max_bytes

    if weight_resident:
        # Block index never changes -> DMA'd from HBM exactly once, stays in VMEM.
        w_spec = pl.BlockSpec((in_pad, out_pad), lambda i, k: (0, 0))
        w_buf_bytes = 2 * w_bytes                       # conservative buffer estimate
    else:
        w_spec = pl.BlockSpec((tk, out_pad), lambda i, k: (k, 0))
        w_buf_bytes = 2 * tk * out_pad * itemsize_w

    est_vmem = (2 * tm_eff * tk * itemsize_x            # x double-buffer
                + w_buf_bytes                           # weight
                + 2 * tm_eff * out_pad * 4              # output/accumulator
                + 4 * out_pad * 4)                      # bias
    vmem_limit = int(min(max(32 * 1024 * 1024, est_vmem + (4 << 20)),
                         56 * 1024 * 1024))             # stay under v7x 64 MiB physical

    kernel = functools.partial(
        _head_kernel, tk=tk, in_features=in_features, needs_mask=needs_mask,
        weight_resident=weight_resident)

    out = pl.pallas_call(
        kernel,
        out_shape=jax.ShapeDtypeStruct((batch, out_pad), jnp.float32),
        grid_spec=pltpu.PrefetchScalarGridSpec(
            num_scalar_prefetch=0,
            grid=(num_rows, num_k),
            in_specs=[
                pl.BlockSpec((tm_eff, tk), lambda i, k: (i, k)),     # x tile
                w_spec,                                              # weight
                pl.BlockSpec((1, out_pad), lambda i, k: (0, 0)),     # bias row
            ],
            out_specs=pl.BlockSpec((tm_eff, out_pad), lambda i, k: (i, 0)),
        ),
        compiler_params=pltpu.CompilerParams(
            dimension_semantics=("parallel", "arbitrary"),
            vmem_limit_bytes=vmem_limit,
        ),
    )(x_flat, w_prep, b_prep)

    return out[:batch, :out_features]


if __name__ == "__main__":
    # Shapes consistent with the module's forward:
    # batch=2, channels=4, spatial=16 -> input_size = 4*16*16 = 1024, output_size = 10
    B, C, H, W = 2, 4, 16, 16
    IN = C * H * W
    OUT = 10

    key = jax.random.PRNGKey(0)
    kx, kw, kb = jax.random.split(key, 3)

    x = jax.random.normal(kx, (B, C, H, W), dtype=jnp.float32)

    # Deterministic parameter init (mimics nn.Linear's U(-1/sqrt(in), 1/sqrt(in)))
    bound = 1.0 / jnp.sqrt(jnp.float32(IN))
    weight = jax.random.uniform(kw, (OUT, IN), minval=-bound, maxval=bound,
                                dtype=jnp.float32)
    bias = jax.random.uniform(kb, (OUT,), minval=-bound, maxval=bound,
                              dtype=jnp.float32)

    # Pure-JAX reference.
    ref = jax.nn.softmax(x.reshape(B, -1) @ weight.T + bias, axis=-1)

    # --- 1) f32, multi-step K reduction (tk=256), VMEM-resident weight. -------
    w_p, b_p, meta = prepare_head_params(weight, bias, tk=256,
                                         compute_dtype=jnp.float32)
    probs = classification_head(x, w_p, b_p, meta)
    jax.block_until_ready(probs)
    assert probs.shape == (B, OUT)
    assert jnp.allclose(probs, ref, atol=5e-3, rtol=5e-3)
    assert jnp.allclose(jnp.sum(probs, axis=-1), 1.0, atol=1e-2)

    # --- 2) same weights, forced K-tiled (streamed) weight path. --------------
    probs_stream = classification_head(x, w_p, b_p, meta,
                                       weight_resident_max_bytes=0)
    jax.block_until_ready(probs_stream)
    assert jnp.allclose(probs_stream, ref, atol=5e-3, rtol=5e-3)

    # --- 3) bf16 MXU path: x stays f32 in HBM, cast to bf16 in-kernel. --------
    w_p16, b_p16, meta16 = prepare_head_params(weight, bias,
                                               compute_dtype=jnp.bfloat16)
    probs16 = classification_head(x, w_p16, b_p16, meta16)
    jax.block_until_ready(probs16)
    assert probs16.shape == (B, OUT)
    assert jnp.allclose(probs16, ref, atol=2e-2)
    assert jnp.allclose(jnp.sum(probs16, axis=-1), 1.0, atol=1e-2)

    # --- 4) K-tail masking + partial row blocks (IN not a multiple of tk,
    #        batch >= 16 -> 2 row tiles, last one partial, no batch padding). --
    B2, IN2, OUT2 = 18, 1000, 10
    k2x, k2w, k2b = jax.random.split(jax.random.PRNGKey(1), 3)
    x2 = jax.random.normal(k2x, (B2, 10, 10, 10), dtype=jnp.float32)
    bound2 = 1.0 / jnp.sqrt(jnp.float32(IN2))
    weight2 = jax.random.uniform(k2w, (OUT2, IN2), minval=-bound2, maxval=bound2,
                                 dtype=jnp.float32)
    bias2 = jax.random.uniform(k2b, (OUT2,), minval=-bound2, maxval=bound2,
                               dtype=jnp.float32)
    ref2 = jax.nn.softmax(x2.reshape(B2, -1) @ weight2.T + bias2, axis=-1)

    w_p2, b_p2, meta2 = prepare_head_params(weight2, bias2, tk=256,
                                            compute_dtype=jnp.float32)
    probs2 = classification_head(x2, w_p2, b_p2, meta2)
    jax.block_until_ready(probs2)
    assert probs2.shape == (B2, OUT2)
    assert jnp.allclose(probs2, ref2, atol=5e-3, rtol=5e-3)

    print("KERNEL_OK")
</pallas_src>

<mosaic_0001>
module attributes {stable_mosaic.version = 11 : i64} {
  func.func @_head_kernel(%arg0: i32, %arg1: i32, %arg2: memref<2x256xf32, #tpu.memory_space<vmem>>, %arg3: memref<1024x128xf32, #tpu.memory_space<vmem>>, %arg4: memref<1x128xf32, #tpu.memory_space<vmem>>, %arg5: memref<2x128xf32, #tpu.memory_space<vmem>>) attributes {dimension_semantics = [#tpu.dimension_semantics<parallel>, #tpu.dimension_semantics<arbitrary>], iteration_bounds = array<i64: 1, 4>, scalar_prefetch = 0 : i64, scratch_operands = 0 : i64, tpu.core_type = #tpu.core_type<tc>, window_params = [{transform_indices = @transform_0, window_bounds = array<i64: 2, 256>}, {pipeline_mode = #tpu.pipeline_mode<synchronous>, transform_indices = @transform_1, window_bounds = array<i64: 1024, 128>}, {pipeline_mode = #tpu.pipeline_mode<synchronous>, transform_indices = @transform_2, window_bounds = array<i64: 1, 128>}, {transform_indices = @transform_3, window_bounds = array<i64: 2, 128>}]} {
    %c0_i32 = arith.constant 0 : i32
    %0 = arith.cmpi eq, %arg1, %c0_i32 : i32
    %1 = arith.extui %0 : i1 to i32
    %c0_i32_0 = arith.constant 0 : i32
    %2 = arith.cmpi ne, %1, %c0_i32_0 : i32
    scf.if %2 {
      %cst_8 = arith.constant 0.000000e+00 : f32
      %15 = vector.broadcast %cst_8 : f32 to vector<2x128xf32>
      %c0_9 = arith.constant 0 : index
      %c0_10 = arith.constant 0 : index
      %16 = vector.load %arg5[%c0_9, %c0_10] : memref<2x128xf32, #tpu.memory_space<vmem>>, vector<2x128xf32>
      tpu.vector_store %arg5[%c0_9, %c0_10], %15 {strides = array<i32>} : memref<2x128xf32, #tpu.memory_space<vmem>>, vector<2x128xf32>,
    } else {
    }
    %c0 = arith.constant 0 : index
    %c0_1 = arith.constant 0 : index
    %3 = vector.load %arg2[%c0, %c0_1] : memref<2x256xf32, #tpu.memory_space<vmem>>, vector<2x256xf32>
    %c256_i32 = arith.constant 256 : i32
    %4 = arith.muli %arg1, %c256_i32 : i32
    %5 = tpu.assume_multiple %4, 256 : i32
    %6 = arith.index_cast %5 : i32 to index
    %c0_2 = arith.constant 0 : index
    %7 = vector.load %arg3[%6, %c0_2] : memref<1024x128xf32, #tpu.memory_space<vmem>>, vector<256x128xf32>
    %c0_3 = arith.constant 0 : index
    %c0_4 = arith.constant 0 : index
    %8 = vector.load %arg5[%c0_3, %c0_4] : memref<2x128xf32, #tpu.memory_space<vmem>>, vector<2x128xf32>
    %cst = arith.constant dense<0.000000e+00> : vector<2x128xf32>
    %9 = tpu.matmul %3, %7, %cst {dimension_numbers = #tpu.dot_dimension_numbers<[1], [0], [0], [1], [0, 0, 1, 1], [], []>} : vector<2x256xf32>, vector<256x128xf32>, vector<2x128xf32> -> vector<2x128xf32>
    %10 = arith.addf %8, %9 : vector<2x128xf32>
    %c0_5 = arith.constant 0 : index
    %c0_6 = arith.constant 0 : index
    %11 = vector.load %arg5[%c0_5, %c0_6] : memref<2x128xf32, #tpu.memory_space<vmem>>, vector<2x128xf32>
    tpu.vector_store %arg5[%c0_5, %c0_6], %10 {strides = array<i32>} : memref<2x128xf32, #tpu.memory_space<vmem>>, vector<2x128xf32>,
    %c3_i32 = arith.constant 3 : i32
    %12 = arith.cmpi eq, %arg1, %c3_i32 : i32
    %13 = arith.extui %12 : i1 to i32
    %c0_i32_7 = arith.constant 0 : i32
    %14 = arith.cmpi ne, %13, %c0_i32_7 : i32
    scf.if %14 {
      %c0_8 = arith.constant 0 : index
      %c0_9 = arith.constant 0 : index
      %15 = vector.load %arg5[%c0_8, %c0_9] : memref<2x128xf32, #tpu.memory_space<vmem>>, vector<2x128xf32>
      %c0_10 = arith.constant 0 : index
      %c0_11 = arith.constant 0 : index
      %16 = vector.load %arg4[%c0_10, %c0_11] : memref<1x128xf32, #tpu.memory_space<vmem>>, vector<1x128xf32>
      %17 = vector.broadcast %16 : vector<1x128xf32> to vector<2x128xf32>
      %18 = arith.addf %15, %17 : vector<2x128xf32>
      %cst_12 = arith.constant dense<0xFF800000> : vector<2xf32>
      %19 = vector.multi_reduction <maximumf>, %18, %cst_12 [1] : vector<2x128xf32> to vector<2xf32>
      %20 = vector.shape_cast %19 : vector<2xf32> to vector<2x1xf32>
      %21 = vector.broadcast %20 : vector<2x1xf32> to vector<2x128xf32>
      %22 = arith.subf %18, %21 : vector<2x128xf32>
      %23 = math.exp %22 : vector<2x128xf32>
      %cst_13 = arith.constant dense<0.000000e+00> : vector<2xf32>
      %24 = vector.multi_reduction <add>, %23, %cst_13 [1] : vector<2x128xf32> to vector<2xf32>
      %25 = vector.shape_cast %24 : vector<2xf32> to vector<2x1xf32>
      %26 = tpu.reciprocal %25 {approx = true} : vector<2x1xf32> -> vector<2x1xf32>
      %27 = vector.broadcast %26 : vector<2x1xf32> to vector<2x128xf32>
      %28 = arith.mulf %23, %27 : vector<2x128xf32>
      %c0_14 = arith.constant 0 : index
      %c0_15 = arith.constant 0 : index
      %29 = vector.load %arg5[%c0_14, %c0_15] : memref<2x128xf32, #tpu.memory_space<vmem>>, vector<2x128xf32>
      tpu.vector_store %arg5[%c0_14, %c0_15], %28 {strides = array<i32>} : memref<2x128xf32, #tpu.memory_space<vmem>>, vector<2x128xf32>,
    } else {
    }
    return
  }
  func.func @transform_0(%arg0: i32, %arg1: i32) -> (i32, i32) {
    %c0_i32 = arith.constant 0 : i32
    return %arg0, %arg1 : i32, i32
  }
  func.func @transform_1(%arg0: i32, %arg1: i32) -> (i32, i32) {
    %c0_i32 = arith.constant 0 : i32
    %c0_i32_0 = arith.constant 0 : i32
    %c0_i32_1 = arith.constant 0 : i32
    return %c0_i32, %c0_i32_0 : i32, i32
  }
  func.func @transform_2(%arg0: i32, %arg1: i32) -> (i32, i32) {
    %c0_i32 = arith.constant 0 : i32
    %c0_i32_0 = arith.constant 0 : i32
    %c0_i32_1 = arith.constant 0 : i32
    return %c0_i32, %c0_i32_0 : i32, i32
  }
  func.func @transform_3(%arg0: i32, %arg1: i32) -> (i32, i32) {
    %c0_i32 = arith.constant 0 : i32
    %c0_i32_0 = arith.constant 0 : i32
    return %arg0, %c0_i32 : i32, i32
  }
}

</mosaic_0001>

<bundles_post_ra>
// kernel: tpu_custom_call.1
= control target key start
LH: loop header
LB: loop body
LE: loop exit
PB: predicated region body
PF: predicated region fallthrough
CT: control target
= control target key end

     0   :  { %8 = vsyncpa [#allocation3], 0  ;;  %s926_s0 = inlined_call_operand.hbm [shape: f32[2,1024], index: 0, kind: input, shape index: {}]   ;;  %s927_s1 = inlined_call_operand.hbm [shape: f32[1024,128], index: 1, kind: input, shape index: {}]   ;;  %s928_s2 = inlined_call_operand.vmem [shape: f32[1,128], index: 2, kind: input, shape index: {}]   ;;  %s929_s3 = inlined_call_operand.hbm [shape: f32[2,128], index: 3, kind: output, shape index: {}]  }
   0x1   :  { %10 = vsyncpa [#allocation3 + $0x1], 0 }
   0x2   :  { %11 = vsyncpa [#allocation6], 0 }
   0x3   :  { %12 = vsyncpa [#allocation4], 0  ;;  %s746_s12 = smov 0   ;;  %s748_s13 = smov 0  }
   0x4   :  { %s750_s14 = smov 0   ;;  %s752_s15 = smov 0  }
   0x5   :  { %s754_s16 = smov 0   ;;  %s756_s17 = smov 0  }
   0x6 LB: > { %s447_s18 = sadd.s32 4294967295, %s718_s17   ;;  %p52_p0 = scmp.ne.s32.totalorder %s702_s13, %s698_s12  ;;  %s718_s17 = sphi %s756_s17, %s18_s17   ;;  %s714_s16 = sphi %s754_s16, %s940_s16   ;;  %s710_s15 = sphi %s752_s15, %s939_s15   ;;  %s706_s14 = sphi %s750_s14, %s938_s14   ;;  %s702_s13 = sphi %s748_s13, %s937_s13   ;;  %s698_s12 = sphi %s746_s12, %s936_s12  }
   0x7   : > { %p778_p1 = scmp.eq.s32.totalorder %s447_s18, 0  ;;  %p448_p2 = scmp.ge.s32.totalorder %s718_s17, 1 }
   0x8   : > { %p131_p3 = scmp.lt.s32.totalorder %s718_s17, 5  ;;  %s720_s22 = smov [#allocation5]  }
   0x9   : > { %p786_p4 = por %p778_p1, %p52_p0  ;;  %s143_s23 = sshll.u32 %s720_s22, 4  ;;  %s144_s23 = int_to_ptr.vmem [resolvable:$true] %s143_s23 }
   0xa   : > { %p790_p5 = pnand %p448_p2, %p131_p3  ;;  %s27_s25 = sadd.s32 1, %s714_s16 }
   0xb   : > { %s593_s26 = scalar_lea.vmem %s144_s23, 16384  ;;  %p601_p12 = scmp.lt.s32.totalorder %s144_s23, %s144_s23 }
   0xc   : > { %p512_p6 = pneg %p790_p5  ;;  %p594_p9 = scmp.ne.s32.totalorder %s144_s23, %s593_s26 }
   0xd   : > { %p602_p13 = scmp.lt.s32.totalorder %s593_s26, %s593_s26 }
   0xe   : > { %p798_p7 = pnand %p512_p6, %p778_p1 }
   0xf   : > { %p603_p0 = por %p602_p13, %p601_p12 }
  0x10   : > { %p584_p8 = pneg %p798_p7 }
  0x12   : > { %p596_p10 = pnand %p594_p9, %p584_p8 }
  0x14   : > { %p597_p11 = pneg %p596_p10 }
  0x16   : > { %p604_p2 = pnand %p603_p0, %p597_p11 }
  0x18   : > { %607 = shalt.err (!%p604_p2)
}
  0x19   : > { %s721_s27 = smov 128   ;;  %s722_s28 = smov 8  }
  0x1a   : > { %515 = dma.hbm_to_vmem [thread:$0]  (!%p798_p7), %s927_s1, 16384, %s144_s23, [#allocation6], %s721_s27, %s721_s27, %s722_s28  }
  0x1b   : > { %p28_p3 = scmp.ge.s32.totalorder %s27_s25, 4  ;;  %s39_s4 = sadd.s32 1, %s706_s14 }
  0x1c   : > { %p46_p6 = scmp.ne.s32.totalorder %s706_s14, %s702_s13  ;;  %p47_p8 = scmp.eq.s32.totalorder %s718_s17, 0 }
  0x1d   : > { %s942_s25 = smov (%p28_p3, %s27_s25), 0  ;;  %p521_p10 = scmp.lt.s32.totalorder %s718_s17, 4 }
  0x1e   : > { %p48_p9 = por %p47_p8, %p46_p6  ;;  %s35_s5 = ssub.s32 %s714_s16, %s942_s25 }
  0x1f   : > { %s160_s6 = sand.u32 1, %s706_s14   ;;  %p37_p11 = scmp.eq.s32.totalorder %s35_s5, 0 }
  0x20   : > { %s451_s7 = sshll.u32 %s160_s6, 2  ;;  %s466_s8 = sshll.u32 %s714_s16, 6 }
  0x21   : > { %s822_s9 = scalar_select %p37_p11, %s706_s14, %s39_s4  }
  0x22   : > { %s172_s12 = scalar_lea.hbm %s926_s0, %s466_s8  ;;  %s164_s22 = scalar_lea.vmem [#allocation2], %s451_s7 }
  0x23   : > { %s174_s23 = sshll.u32 %s164_s22, 4  ;;  %p827_p7 = pnand %p521_p10, %p48_p9  ;;  %s175_s23 = int_to_ptr.vmem [resolvable:$true] %s174_s23 }
  0x24   : > { %s161_s26 = scalar_lea.sflag [#allocation3], %s160_s6  ;;  %s621_s27 = scalar_lea.vmem %s175_s23, 64 }
  0x25   : > { %p610_p12 = pneg %p827_p7  ;;  %p622_p13 = scmp.ne.s32.totalorder %s175_s23, %s621_s27 }
  0x26   : > { %s723_s28 = smov [#allocation2]  }
  0x27   : > { %p624_p0 = pnand %p622_p13, %p610_p12  ;;  %s626_s29 = sshll.u32 %s723_s28, 4  ;;  %s627_s29 = int_to_ptr.vmem [resolvable:$false] %s626_s29 }
  0x28   : > { %s628_s30 = scalar_lea.vmem %s627_s29, 128  ;;  %p629_p3 = scmp.lt.s32.totalorder %s175_s23, %s627_s29 }
  0x29   : > { %p625_p2 = pneg %p624_p0  ;;  %p630_p6 = scmp.lt.s32.totalorder %s628_s30, %s621_s27 }
  0x2b   : > { %p631_p8 = por %p630_p6, %p629_p3 }
  0x2d   : > { %p632_p9 = pnand %p631_p8, %p625_p2 }
  0x2f   : > { %635 = shalt.err (!%p632_p9)
}
  0x30   : > { %519 = dma.hbm_to_vmem [thread:$0]  (!%p827_p7), %s172_s12, 64, %s175_s23, %s161_s26  }
  0x31   : > { %183 = sbr.rel (%p790_p5) target bundleno = 638 (0x27e), region = 32  ;;  %s185_s4 = sand.u32 (!%p790_p5), 1, %s702_s13  }
  0x32   : > { %s455_s5 = sshll.u32 (!%p790_p5), %s185_s4, 2  ;;  %s186_s6 = scalar_lea.sflag (!%p790_p5), [#allocation3], %s185_s4 }
  0x33   : > { %s189_s7 = scalar_lea.vmem (!%p790_p5), [#allocation2], %s455_s5 }
  0x36   : > { %685 = dma.done.wait (%p786_p4), %s186_s6, 64  }
  0x37   : > { %687 = vsyncadd (%p786_p4), %s186_s6, 4294967232 }
  0x38   : > { %689 = dma.done.wait (%p778_p1), [#allocation6], 16384  }
  0x39   : > { %691 = vsyncadd (%p778_p1), [#allocation6], 4294950912  ;;  %p457_p10 = scmp.ne.s32.totalorder %s710_s15, 0 }
  0x3b   : > { %215 = sbr.rel (%p457_p10) target bundleno = 66 (0x42), region = 44 }
  0x40   : > { %v724_v0 = vmov 0.0  }
  0x41   : > { %216 = vst [vmem:[#allocation7] sm:$0x3] %v724_v0 }
  0x42 PF: > { %s458_s21 = sshll.u32 %s710_s15, 8  ;;  %v848_v1 = vld.sshfl [vmem:[%s189_s7] sm:$0x33 pattern:$0x76325410]  ;;  %p460_p1 = scmp.ne.s32.totalorder %s710_s15, 3 }
  0x43   : > { %v261_v2 = vcombine.high %v848_v1, %v848_v1  ;;  %s852_s20 = scalar_lea.vmem [#allocation5], %s458_s21 }
  0x44   : > { %v251_v3 = vld [vmem:[%s852_s20 + $0xf8] sm:$0xff]  ;;  %v250_v5 = vld [vmem:[%s852_s20 + $0xf0] sm:$0xff]  ;;  %v249_v7 = vld [vmem:[%s852_s20 + $0xe8] sm:$0xff] }
  0x45   : > { %v235_v4 = vld [vmem:[%s852_s20 + $0x78] sm:$0xff]  ;;  %467 = vmatprep.subr.mxu0 %v251_v3  ;;  %v234_v6 = vld [vmem:[%s852_s20 + $0x70] sm:$0xff]  ;;  %328 = vmatprep.mubr.f32.mxu0 %v261_v2  ;;  %v233_v8 = vld [vmem:[%s852_s20 + $0x68] sm:$0xff] }
  0x46   : > { %468 = vmatpush3.msra.mxu0 %v235_v4  ;;  %v248_v9 = vld [vmem:[%s852_s20 + $0xe0] sm:$0xff]  ;;  %v247_v11 = vld [vmem:[%s852_s20 + $0xd8] sm:$0xff]  ;;  %v246_v13 = vld [vmem:[%s852_s20 + $0xd0] sm:$0xff] }
  0x47   : > { %469 = vmatprep.subr.mxu0 %v250_v5  ;;  %v232_v10 = vld [vmem:[%s852_s20 + $0x60] sm:$0xff]  ;;  %v231_v12 = vld [vmem:[%s852_s20 + $0x58] sm:$0xff]  ;;  %v230_v14 = vld [vmem:[%s852_s20 + $0x50] sm:$0xff] }
  0x48   : > { %470 = vmatpush3.msra.mxu0 %v234_v6  ;;  %v245_v15 = vld [vmem:[%s852_s20 + $0xc8] sm:$0xff]  ;;  %v244_v17 = vld [vmem:[%s852_s20 + $0xc0] sm:$0xff]  ;;  %v243_v19 = vld [vmem:[%s852_s20 + $0xb8] sm:$0xff] }
  0x49   : > { %471 = vmatprep.subr.mxu0 %v249_v7  ;;  %v229_v16 = vld [vmem:[%s852_s20 + $0x48] sm:$0xff]  ;;  %v228_v18 = vld [vmem:[%s852_s20 + $0x40] sm:$0xff]  ;;  %v227_v20 = vld [vmem:[%s852_s20 + $0x38] sm:$0xff] }
  0x4a   : > { %472 = vmatpush3.msra.mxu0 %v233_v8  ;;  %v242_v21 = vld [vmem:[%s852_s20 + $0xb0] sm:$0xff]  ;;  %v241_v23 = vld [vmem:[%s852_s20 + $0xa8] sm:$0xff]  ;;  %v240_v25 = vld [vmem:[%s852_s20 + $0xa0] sm:$0xff] }
  0x4b   : > { %473 = vmatprep.subr.mxu0 %v248_v9  ;;  %v226_v22 = vld [vmem:[%s852_s20 + $0x30] sm:$0xff]  ;;  %v225_v24 = vld [vmem:[%s852_s20 + $0x28] sm:$0xff]  ;;  %v224_v26 = vld [vmem:[%s852_s20 + $0x20] sm:$0xff] }
  0x4c   : > { %474 = vmatpush3.msra.mxu0 %v232_v10  ;;  %v239_v27 = vld [vmem:[%s852_s20 + $0x98] sm:$0xff]  ;;  %v238_v29 = vld [vmem:[%s852_s20 + $0x90] sm:$0xff]  ;;  %v237_v31 = vld [vmem:[%s852_s20 + $0x88] sm:$0xff] }
  0x4d   : > { %475 = vmatprep.subr.mxu0 %v247_v11  ;;  %v223_v28 = vld [vmem:[%s852_s20 + $0x18] sm:$0xff]  ;;  %v222_v30 = vld [vmem:[%s852_s20 + $0x10] sm:$0xff]  ;;  %v221_v32 = vld [vmem:[%s852_s20 + $0x8] sm:$0xff] }
  0x4e   : > { %476 = vmatpush3.msra.mxu0 %v231_v12  ;;  %v236_v33 = vld [vmem:[%s852_s20 + $0x80] sm:$0xff]  ;;  %v252_v36 = vld [vmem:[#allocation7] sm:$0x3] }
  0x4f   : > { %477 = vmatprep.subr.mxu0 %v246_v13  ;;  %v220_v34 = vld [vmem:[%s852_s20] sm:$0xff] }
  0x50   : > { %478 = vmatpush3.msra.mxu0 %v230_v14 }
  0x51   : > { %479 = vmatprep.subr.mxu0 %v245_v15 }
  0x52   : > { %480 = vmatpush3.msra.mxu0 %v229_v16 }
  0x53   : > { %481 = vmatprep.subr.mxu0 %v244_v17 }
  0x54   : > { %482 = vmatpush3.msra.mxu0 %v228_v18 }
  0x55   : > { %483 = vmatprep.subr.mxu0 %v243_v19 }
  0x56   : > { %484 = vmatpush3.msra.mxu0 %v227_v20 }
  0x57   : > { %485 = vmatprep.subr.mxu0 %v242_v21 }
  0x58   : > { %486 = vmatpush3.msra.mxu0 %v226_v22 }
  0x59   : > { %487 = vmatprep.subr.mxu0 %v241_v23 }
  0x5a   : > { %488 = vmatpush3.msra.mxu0 %v225_v24 }
  0x5b   : > { %489 = vmatprep.subr.mxu0 %v240_v25 }
  0x5c   : > { %490 = vmatpush3.msra.mxu0 %v224_v26 }
  0x5d   : > { %491 = vmatprep.subr.mxu0 %v239_v27 }
  0x5e   : > { %492 = vmatpush3.msra.mxu0 %v223_v28 }
  0x5f   : > { %493 = vmatprep.subr.mxu0 %v238_v29 }
  0x60   : > { %494 = vmatpush3.msra.mxu0 %v222_v30 }
  0x61   : > { %495 = vmatprep.subr.mxu0 %v237_v31 }
  0x62   : > { %496 = vmatpush3.msra.mxu0 %v221_v32 }
  0x63   : > { %497 = vmatprep.subr.mxu0 %v236_v33 }
  0x64   : > { %498 = vmatpush3.msra.mxu0 %v220_v34 }
  0x65   : > { %329 = vmatmul.mubr.f32.vlgmr.msra.gmra.mxu0 %v848_v1 }
 0x125   : > { %v499_v35 = vpop.f32.mrf.mxu0 }
 0x127   : > { %v500_v37 = vpop.f32.mrf.mxu0 }
 0x128   : > { %v501_v38 = vadd.f32 %v500_v37, %v499_v35  ;;  %339 = sbr.rel (%p460_p1) target bundleno = 623 (0x26f), region = 48 }
 0x12a   : > { %v334_v39 = vadd.f32 %v501_v38, %v252_v36 }
 0x12c   : > { %335 = vst [vmem:[#allocation7] sm:$0x3] %v334_v39 }
 0x12d   : > { %v461_v41 = vld [vmem:[%s928_s2] ss:$0 sm:$0xff]  ;;  %vm349_vm0 = vcmask 1041408  }
 0x133   : > { %v340_v40 = vld [vmem:[#allocation7] sm:$0x3] }
 0x134   : > { %v348_v42 = vadd.f32 %v461_v41, %v340_v40 }
 0x136   : > { %v350_v43 = vsel %vm349_vm0, %v348_v42, -inf }
 0x137   : > { %351 = vmax.xlane.f32.xlu0 %v350_v43 }
 0x1c0   : > { %v352_v44 = vpop.xlane.xlu0 %351 }
 0x1c1   : > { %v353_v45 = vsub.f32 %v348_v42, %v352_v44 }
 0x1c3   : > { %v354_v46 = vmul.f32 1.442695, %v353_v45 }
 0x1c5   : > { %578 = vpow2.f32 %v354_v46 }
 0x1d2   : > { %v579_v47 = vpop.eup %578 }
 0x1d3   : > { %v356_v48 = vsel %vm349_vm0, %v579_v47, 0.0 }
 0x1d4   : > { %357 = vadd.xlane.f32.xlu0 %v356_v48 }
 0x25d   : > { %v358_v49 = vpop.xlane.xlu0 %357 }
 0x25e   : > { %580 = vrcp.f32 %v358_v49 }
 0x26b   : > { %v581_v50 = vpop.eup %580 }
 0x26c   : > { %v360_v51 = vmul.f32 %v581_v50, %v579_v47 }
 0x26e   : > { %361 = vst [vmem:[#allocation7] sm:$0x3] %v360_v51 }
 0x26f PF: > { %p893_p4 = scmp.eq.s32.totalorder %s447_s18, 3  ;;  %s725_s10 = smov [#allocation7]  }
 0x270   : > { %s371_s11 = sshll.u32 %s725_s10, 4  ;;  %s372_s11 = int_to_ptr.vmem [resolvable:$true] %s371_s11 }
 0x271   : > { %s636_s12 = scalar_lea.vmem %s372_s11, 32  ;;  %p643_p12 = scmp.lt.s32.totalorder %s372_s11, %s372_s11 }
 0x272   : > { %p637_p5 = scmp.ne.s32.totalorder %s372_s11, %s636_s12  ;;  %p644_p13 = scmp.lt.s32.totalorder %s636_s12, %s636_s12 }
 0x274   : > { %p638_p11 = pnand %p637_p5, %p893_p4  ;;  %p645_p0 = por %p644_p13, %p643_p12 }
 0x276   : > { %p639_p7 = pneg %p638_p11 }
 0x278   : > { %p646_p2 = pnand %p645_p0, %p639_p7 }
 0x27a   : > { %649 = shalt.err (!%p646_p2)
}
 0x27b   : > { %509 = dma.vmem_to_hbm [thread:$0]  (%p893_p4), %s372_s11, 32, %s929_s3, [#allocation4]  }
 0x27c   : > { %693 = dma.done.wait (%p893_p4), [#allocation4], 32  }
 0x27d   : > { %695 = vsyncadd (%p893_p4), [#allocation4], 4294967264 }
 0x27e PF: > { %s18_s17 = sadd.s32 1, %s718_s17   ;;  %s936_s12 = smov %s702_s13 }
 0x27f   : > { %p15_p3 = scmp.ge.s32.totalorder %s18_s17, 6   ;;  %s937_s13 = smov %s706_s14 }
 0x280   : > { %s938_s14 = smov %s822_s9  ;;  %s939_s15 = smov %s714_s16 }
 0x281   : > { %s940_s16 = smov %s942_s25  ;;  %17 = sbr.rel (!%p15_p3) target bundleno = 6 (0x6), region = 83 }
 0x286   :  { %384 = vsyncpa [#allocation3], 1 }
 0x287   :  { %386 = vsyncpa [#allocation3 + $0x1], 1 }
 0x288   :  { %387 = vsyncpa [#allocation6], 1 }
 0x289   :  { %388 = vsyncpa [#allocation4], 1 }
 0x28a   :  { %390 = vsyncpa [#allocation4 + $0x1], 1 }

</bundles_post_ra>
